<compile_context>
chip_gen: v7x
topology: tpu7x:2x2x1
jax: 0.10.0
libtpu: 0.0.40
codegen_flags: <defaults>
</compile_context>

<pallas_src>
import math
import jax
import jax.numpy as jnp
from jax import lax
from jax.experimental import pallas as pl
from jax.experimental.pallas import tpu as pltpu


def _round_up(x, m):
    return ((x + m - 1) // m) * m


def _pick_batch_tile(bp):
    # >=2 batch tiles when the batch is big enough (v7x megacore sharding of the "parallel"
    # axis), capped at 128 rows per tile to bound vreg pressure in the unrolled GRU step.
    if bp < 32:
        return bp
    return min(128, _round_up((bp + 1) // 2, 16))


# ----------------------------------------------------------------------------
# Kernel A: scalar-prefetch row gather from HBM tables + concat (pre-shifted
# padded tables -> add) + input projection gi = embed @ W_ih^T + b_ih (bf16 out).
# Grid = (row_blocks,). ids are in SMEM; tables stay in HBM (pl.ANY); W_ih/b_ih
# are VMEM-resident (constant index_map). gi output is lane-dense (3*Hp lanes).
# ----------------------------------------------------------------------------
def _make_embed_proj_kernel(with_embed_out):
    def kernel(ids_item_ref, ids_fb_ref,     # SMEM (N,) int32, scalar-prefetch
               item_hbm, fb_hbm,             # HBM (Vi, EP), (Vf, EP) f32
               wih_ref, bih_ref,             # VMEM (EP, 3Hp) f32, (1, 3Hp) f32
               *rest):
        if with_embed_out:
            emb_ref, gi_ref, emb_i, emb_f, sem = rest
        else:
            emb_ref = None
            gi_ref, emb_i, emb_f, sem = rest

        nr = gi_ref.shape[0]
        base = pl.program_id(0) * nr

        # 1) Issue all row-gather DMAs for this block (ids come from SMEM).
        @pl.loop(0, nr)
        def _issue(r):
            pltpu.make_async_copy(item_hbm.at[ids_item_ref[base + r]],
                                  emb_i.at[r], sem.at[0]).start()
            pltpu.make_async_copy(fb_hbm.at[ids_fb_ref[base + r]],
                                  emb_f.at[r], sem.at[1]).start()

        # 2) Drain: wait once per issued copy (wait descriptors only need matching shapes).
        @pl.loop(0, nr)
        def _drain(r):
            pltpu.make_async_copy(item_hbm.at[0], emb_i.at[0], sem.at[0]).wait()
            pltpu.make_async_copy(fb_hbm.at[0], emb_f.at[0], sem.at[1]).wait()

        # 3) Concat (add of pre-shifted padded rows) + input projection, in 128-row
        #    sub-tiles to bound the live vreg set; gi written as bf16.
        for r0 in range(0, nr, 128):
            rs = min(128, nr - r0)
            emb_t = emb_i[r0:r0 + rs, :] + emb_f[r0:r0 + rs, :]      # (rs, EP) f32
            if with_embed_out:
                emb_ref[r0:r0 + rs, :] = emb_t                       # eval dropout = identity
            gi_t = (jnp.dot(emb_t, wih_ref[...], preferred_element_type=jnp.float32)
                    + bih_ref[...])                                  # b_ih folded here
            gi_ref[r0:r0 + rs, :] = gi_t.astype(gi_ref.dtype)
    return kernel


def embed_and_project(ids_item, ids_fb, item_tab_pad, fb_tab_pad, wih_t_pad, bih_pad,
                      *, rows_per_block, return_embed, gi_dtype=jnp.bfloat16):
    n = ids_item.shape[0]
    _, ep = item_tab_pad.shape
    g = wih_t_pad.shape[1]
    nr = rows_per_block
    assert n % nr == 0
    nblk = n // nr

    gi_shape = jax.ShapeDtypeStruct((n, g), gi_dtype)
    gi_spec = pl.BlockSpec((nr, g), lambda i, *_: (i, 0))
    if return_embed:
        out_shape = (jax.ShapeDtypeStruct((n, ep), jnp.float32), gi_shape)
        out_specs = [pl.BlockSpec((nr, ep), lambda i, *_: (i, 0)), gi_spec]
    else:
        out_shape = gi_shape
        out_specs = gi_spec

    grid_spec = pltpu.PrefetchScalarGridSpec(
        num_scalar_prefetch=2,                               # item ids, feedback ids -> SMEM
        grid=(nblk,),
        in_specs=[
            pl.BlockSpec(memory_space=pl.ANY),               # item table stays in HBM
            pl.BlockSpec(memory_space=pl.ANY),               # feedback table stays in HBM
            pl.BlockSpec((ep, g), lambda i, *_: (0, 0)),     # W_ih^T, VMEM-resident
            pl.BlockSpec((1, g), lambda i, *_: (0, 0)),      # b_ih, VMEM-resident
        ],
        out_specs=out_specs,
        scratch_shapes=[
            pltpu.VMEM((nr, ep), jnp.float32),               # gathered item rows
            pltpu.VMEM((nr, ep), jnp.float32),               # gathered feedback rows
            pltpu.SemaphoreType.DMA((2,)),
        ])

    outs = pl.pallas_call(
        _make_embed_proj_kernel(return_embed),
        out_shape=out_shape,
        grid_spec=grid_spec,
        # gather-DMA bound: keep the row-block axis "arbitrary" (megacore is spent on Kernel B).
        compiler_params=pltpu.CompilerParams(
            dimension_semantics=("arbitrary",),
            vmem_limit_bytes=32 * 1024 * 1024),
    )(ids_item, ids_fb, item_tab_pad, fb_tab_pad, wih_t_pad, bih_pad)

    if return_embed:
        emb, gi = outs
        return gi, emb
    return outs, None


# ----------------------------------------------------------------------------
# Kernel B: GRU recurrence. Grid = (batch_tiles, time_chunks); the resident
# (Bt, Hp) output block IS the hidden-state accumulator. Each grid step runs Tc
# unrolled recurrence steps on a bf16 gi chunk; the recurrent projection is done
# gate-by-gate with bf16 operands and f32 accumulation (low vreg pressure).
# ----------------------------------------------------------------------------
def _gru_kernel(len_ref, gi_ref, whh_ref, bhh_ref, h_ref):
    t_blk = pl.program_id(1)                  # time-chunk index (sequential axis)
    tc = gi_ref.shape[0]
    hp = h_ref.shape[-1]

    @pl.when(t_blk == 0)
    def _():
        h_ref[...] = jnp.zeros_like(h_ref)

    lens = len_ref[...]                       # (Bt, 1) int32
    whh = whh_ref[...]                        # (Hp, 3Hp) bf16 (per-gate padded)
    bhh = bhh_ref[...]                        # (1, 3Hp) f32
    w_r, w_z, w_n = whh[:, 0:hp], whh[:, hp:2 * hp], whh[:, 2 * hp:3 * hp]
    b_r, b_z, b_n = bhh[:, 0:hp], bhh[:, hp:2 * hp], bhh[:, 2 * hp:3 * hp]

    def step(s, h):
        hb = h.astype(jnp.bfloat16)
        gi_s = gi_ref[s]                      # (Bt, 3Hp) bf16, b_ih already folded in
        i_r = gi_s[:, 0:hp].astype(jnp.float32)
        i_z = gi_s[:, hp:2 * hp].astype(jnp.float32)
        i_n = gi_s[:, 2 * hp:3 * hp].astype(jnp.float32)
        # gate-by-gate recurrent projection: the full (Bt, 3Hp) gh is never live.
        r = jax.nn.sigmoid(i_r + jnp.dot(hb, w_r, preferred_element_type=jnp.float32) + b_r)
        z = jax.nn.sigmoid(i_z + jnp.dot(hb, w_z, preferred_element_type=jnp.float32) + b_z)
        n = jnp.tanh(i_n + r * (jnp.dot(hb, w_n, preferred_element_type=jnp.float32) + b_n))
        h_new = (1.0 - z) * n + z * h
        valid = (t_blk * tc + s) < lens       # (Bt, 1); freeze hidden past seq_length
        return jnp.where(valid, h_new, h)

    h_ref[...] = lax.fori_loop(0, tc, step, h_ref[...], unroll=True)


def gru_last_hidden(gi_tm, seq_length_col, whh_t_pad, bhh_pad, *, time_chunk, batch_tile):
    """gi_tm: (Tp, Bp, 3*Hp) bf16 (time-major, b_ih folded); returns (Bp, Hp) f32 last hidden."""
    tp, bp, g = gi_tm.shape
    hp = whh_t_pad.shape[0]
    tc, bt = time_chunk, batch_tile
    nb, nt = bp // bt, tp // tc

    return pl.pallas_call(
        _gru_kernel,
        out_shape=jax.ShapeDtypeStruct((bp, hp), jnp.float32),
        grid=(nb, nt),
        in_specs=[
            pl.BlockSpec((bt, 1), lambda b, t: (b, 0)),          # seq_length
            pl.BlockSpec((tc, bt, g), lambda b, t: (t, b, 0)),   # gi chunk (bf16)
            pl.BlockSpec((hp, g), lambda b, t: (0, 0)),          # W_hh^T (bf16, per-gate padded)
            pl.BlockSpec((1, g), lambda b, t: (0, 0)),           # b_hh (f32, per-gate padded)
        ],
        out_specs=pl.BlockSpec((bt, hp), lambda b, t: (b, 0)),   # resident hidden accumulator
        compiler_params=pltpu.CompilerParams(
            dimension_semantics=("parallel", "arbitrary"),
            vmem_limit_bytes=32 * 1024 * 1024),                  # raise alongside time_chunk
    )(seq_length_col, gi_tm, whh_t_pad, bhh_pad)


# ----------------------------------------------------------------------------
# Parameters: logical PyTorch-shaped params + lane-aligned packed kernel layouts.
# ----------------------------------------------------------------------------
def make_params(key, item_size, item_embed_size, feedback_size, feedback_embed_size,
                hidden_size):
    k_item, k_fb, k_wi, k_wh, k_bi, k_bh = jax.random.split(key, 6)

    D1, D2, H = item_embed_size, feedback_embed_size, hidden_size
    E = D1 + D2

    std = 1.0 / math.sqrt(D1)
    item_emb = jax.random.uniform(k_item, (item_size, D1), jnp.float32, -std, std)
    fb_emb = jax.random.normal(k_fb, (feedback_size, D2), jnp.float32)

    k_gru = 1.0 / math.sqrt(H)
    # stored pre-transposed: (E, 3H) / (H, 3H); gate order (r, z, n)
    w_ih_t = jax.random.uniform(k_wi, (E, 3 * H), jnp.float32, -k_gru, k_gru)
    w_hh_t = jax.random.uniform(k_wh, (H, 3 * H), jnp.float32, -k_gru, k_gru)
    b_ih = jax.random.uniform(k_bi, (3 * H,), jnp.float32, -k_gru, k_gru)
    b_hh = jax.random.uniform(k_bh, (3 * H,), jnp.float32, -k_gru, k_gru)

    # ---- pack into lane-aligned kernel layouts (per-gate padding to Hp lanes) ----
    EP = _round_up(E, 128)
    Hp = _round_up(H, 128)
    G = 3 * Hp

    # pre-shifted padded tables: item occupies cols [0:D1], feedback cols [D1:E] -> add == concat
    item_tab_pad = jnp.zeros((item_size, EP), jnp.float32).at[:, :D1].set(item_emb)
    fb_tab_pad = jnp.zeros((feedback_size, EP), jnp.float32).at[:, D1:D1 + D2].set(fb_emb)

    wih_t_pad = jnp.zeros((EP, G), jnp.float32)
    whh_t_pad = jnp.zeros((Hp, G), jnp.float32)
    bih_pad = jnp.zeros((1, G), jnp.float32)
    bhh_pad = jnp.zeros((1, G), jnp.float32)
    for g in range(3):
        wih_t_pad = wih_t_pad.at[:E, g * Hp:g * Hp + H].set(w_ih_t[:, g * H:(g + 1) * H])
        whh_t_pad = whh_t_pad.at[:H, g * Hp:g * Hp + H].set(w_hh_t[:, g * H:(g + 1) * H])
        bih_pad = bih_pad.at[0, g * Hp:g * Hp + H].set(b_ih[g * H:(g + 1) * H])
        bhh_pad = bhh_pad.at[0, g * Hp:g * Hp + H].set(b_hh[g * H:(g + 1) * H])
    whh_t_pad = whh_t_pad.astype(jnp.bfloat16)   # bf16 recurrent matmul operands

    return dict(
        # logical (PyTorch-equivalent) params, used by the pure-JAX reference
        item_emb=item_emb, fb_emb=fb_emb, w_ih_t=w_ih_t, w_hh_t=w_hh_t,
        b_ih=b_ih, b_hh=b_hh,
        # packed, lane-aligned kernel params
        item_tab_pad=item_tab_pad, fb_tab_pad=fb_tab_pad,
        wih_t_pad=wih_t_pad, whh_t_pad=whh_t_pad, bih_pad=bih_pad, bhh_pad=bhh_pad,
        item_embed_size=D1, feedback_embed_size=D2,
        embed_size=E, hidden_size=H, Hp=Hp, EP=EP)


def rnn_encoder_forward(params, seq_items, seq_feedbacks, seq_length,
                        return_embed=False, time_chunk=32, row_block=512):
    B, T = seq_items.shape
    E, H = params["embed_size"], params["hidden_size"]
    EP, Hp = params["EP"], params["Hp"]

    Bp = _round_up(B, 8)
    Bt = _pick_batch_tile(Bp)
    Bp = _round_up(Bp, Bt)

    Tc = max(1, min(time_chunk, T))
    Tp = _round_up(T, Tc)

    # Pad batch to a tile multiple / time to a chunk multiple (tiny int32 wrapper ops).
    # Padded rows use id 0 and seq_length 0 -> their hidden stays 0 and is sliced away.
    items_p = jnp.zeros((Bp, Tp), jnp.int32).at[:B, :T].set(seq_items.astype(jnp.int32))
    fbs_p = jnp.zeros((Bp, Tp), jnp.int32).at[:B, :T].set(seq_feedbacks.astype(jnp.int32))
    lens_p = jnp.zeros((Bp, 1), jnp.int32).at[:B, 0].set(seq_length.astype(jnp.int32))

    # Time-major flatten: row (t, b) -> t*Bp + b (1-D int32 -> SMEM scalar prefetch).
    ids_item_tm = items_p.T.reshape(Tp * Bp)
    ids_fb_tm = fbs_p.T.reshape(Tp * Bp)

    # Kernel-A row blocking: whole time steps per block so blocks tile Tp*Bp exactly.
    ta = max(1, min(Tp, max(1, row_block // Bp)))
    ta = math.gcd(ta, Tp)
    rows_per_block = ta * Bp

    gi_flat, emb_flat = embed_and_project(
        ids_item_tm, ids_fb_tm,
        params["item_tab_pad"], params["fb_tab_pad"],
        params["wih_t_pad"], params["bih_pad"],
        rows_per_block=rows_per_block, return_embed=return_embed)
    # embed_dropout: identity in eval mode.
    # TODO(synk): train-mode dropout RNG not implemented.

    gi_tm = gi_flat.reshape(Tp, Bp, 3 * Hp)
    h_last = gru_last_hidden(gi_tm, lens_p, params["whh_t_pad"], params["bhh_pad"],
                             time_chunk=Tc, batch_tile=Bt)
    sess_dense = h_last[:B, :H]
    if return_embed:
        sess_embed = emb_flat.reshape(Tp, Bp, EP)[:T, :B, :E].transpose(1, 0, 2)
        return sess_embed, sess_dense
    return sess_dense


# ----------------------------------------------------------------------------
# Pure-JAX reference (f32, HIGHEST precision) — for correctness checking only.
# ----------------------------------------------------------------------------
def _reference_forward(p, seq_items, seq_feedbacks, seq_length):
    item_e = p["item_emb"][seq_items]               # (B, T, D1)
    fb_e = p["fb_emb"][seq_feedbacks]               # (B, T, D2)
    x = jnp.concatenate([item_e, fb_e], axis=-1)    # (B, T, E)
    B, T, _ = x.shape
    H = p["hidden_size"]
    hi = lax.Precision.HIGHEST
    h = jnp.zeros((B, H), jnp.float32)
    for t in range(T):
        xt = x[:, t]
        gi = jnp.dot(xt, p["w_ih_t"], precision=hi) + p["b_ih"]
        gh = jnp.dot(h, p["w_hh_t"], precision=hi) + p["b_hh"]
        i_r, i_z, i_n = gi[:, :H], gi[:, H:2 * H], gi[:, 2 * H:]
        h_r, h_z, h_n = gh[:, :H], gh[:, H:2 * H], gh[:, 2 * H:]
        r = jax.nn.sigmoid(i_r + h_r)
        z = jax.nn.sigmoid(i_z + h_z)
        n = jnp.tanh(i_n + r * h_n)
        h_new = (1.0 - z) * n + z * h
        valid = (t < seq_length)[:, None]
        h = jnp.where(valid, h_new, h)
    return x, h


if __name__ == "__main__":
    key = jax.random.PRNGKey(0)
    B, T = 2, 8
    item_size, item_embed_size = 50, 16
    feedback_size, feedback_embed_size = 5, 8
    hidden_size = 32

    k_p, k_i, k_f = jax.random.split(key, 3)
    params = make_params(k_p, item_size, item_embed_size,
                         feedback_size, feedback_embed_size, hidden_size)

    seq_items = jax.random.randint(k_i, (B, T), 1, item_size, dtype=jnp.int32)
    seq_feedbacks = jax.random.randint(k_f, (B, T), 0, feedback_size, dtype=jnp.int32)
    seq_length = jnp.array([T, 5], dtype=jnp.int32)

    sess_embed, sess_dense = rnn_encoder_forward(params, seq_items, seq_feedbacks,
                                                 seq_length, return_embed=True)
    sess_dense_only = rnn_encoder_forward(params, seq_items, seq_feedbacks,
                                          seq_length, return_embed=False)
    jax.block_until_ready((sess_embed, sess_dense, sess_dense_only))

    assert sess_embed.shape == (B, T, item_embed_size + feedback_embed_size)
    assert sess_dense.shape == (B, hidden_size)
    assert sess_dense_only.shape == (B, hidden_size)

    ref_embed, ref_dense = _reference_forward(params, seq_items, seq_feedbacks, seq_length)
    emb_err = float(jnp.max(jnp.abs(sess_embed - ref_embed)))
    dense_err = float(jnp.max(jnp.abs(sess_dense - ref_dense)))
    variant_err = float(jnp.max(jnp.abs(sess_dense - sess_dense_only)))

    # Embedding gather is exact; the GRU path carries a bf16 gi stream and bf16 recurrent
    # matmuls (f32 accumulation), so compare against the f32 reference at bf16 scale.
    assert emb_err < 1e-5, f"embed mismatch: {emb_err}"
    assert dense_err < 5e-2, f"dense mismatch: {dense_err}"
    assert variant_err < 1e-6, f"return_embed variants disagree: {variant_err}"
    print("KERNEL_OK")
</pallas_src>

<mosaic_0001>
module attributes {stable_mosaic.version = 11 : i64} {
  func.func @kernel(%arg0: i32, %arg1: memref<64xi32, #tpu.memory_space<smem>>, %arg2: memref<64xi32, #tpu.memory_space<smem>>, %arg3: memref<50x128xf32, #tpu.memory_space<any>>, %arg4: memref<5x128xf32, #tpu.memory_space<any>>, %arg5: memref<128x384xf32, #tpu.memory_space<vmem>>, %arg6: memref<1x384xf32, #tpu.memory_space<vmem>>, %arg7: memref<64x128xf32, #tpu.memory_space<vmem>>, %arg8: memref<64x384xbf16, #tpu.memory_space<vmem>>, %arg9: memref<64x128xf32, #tpu.memory_space<vmem>>, %arg10: memref<64x128xf32, #tpu.memory_space<vmem>>, %arg11: memref<2x!tpu.dma_semaphore, #tpu.memory_space<semaphore_mem>>) attributes {dimension_semantics = [#tpu.dimension_semantics<arbitrary>], iteration_bounds = array<i64: 1>, scalar_prefetch = 2 : i64, scratch_operands = 3 : i64, tpu.core_type = #tpu.core_type<tc>, window_params = [{}, {}, {pipeline_mode = #tpu.pipeline_mode<synchronous>, transform_indices = @transform_2, window_bounds = array<i64: 128, 384>}, {pipeline_mode = #tpu.pipeline_mode<synchronous>, transform_indices = @transform_3, window_bounds = array<i64: 1, 384>}, {transform_indices = @transform_4, window_bounds = array<i64: 64, 128>}, {transform_indices = @transform_5, window_bounds = array<i64: 64, 384>}]} {
    %c64_i32 = arith.constant 64 : i32
    %0 = arith.muli %arg0, %c64_i32 : i32
    %c0_i32 = arith.constant 0 : i32
    %c64_i32_0 = arith.constant 64 : i32
    %1 = arith.addi %c0_i32, %c64_i32_0 : i32
    %c1_i32 = arith.constant 1 : i32
    scf.for %arg12 = %c0_i32 to %1 step %c1_i32  : i32 {
      %c1_i32_16 = arith.constant 1 : i32
      %14 = arith.muli %arg12, %c1_i32_16 : i32
      %c0_i32_17 = arith.constant 0 : i32
      %15 = arith.addi %c0_i32_17, %14 : i32
      %16 = arith.addi %0, %15 : i32
      %17 = arith.index_cast %16 : i32 to index
      %18 = memref.load %arg1[%17] : memref<64xi32, #tpu.memory_space<smem>>
      %c0_i32_18 = arith.constant 0 : i32
      %c0_i32_19 = arith.constant 0 : i32
      %19 = tpu.memref_slice %arg3[%18, %c0_i32_19] : memref<50x128xf32, #tpu.memory_space<any>> -> memref<1x128xf32, #tpu.memory_space<any>>
      %20 = tpu.memref_squeeze %19 : memref<1x128xf32, #tpu.memory_space<any>> -> memref<128xf32, #tpu.memory_space<any>>
      %c0_i32_20 = arith.constant 0 : i32
      %21 = tpu.memref_slice %arg9[%15, %c0_i32_20] : memref<64x128xf32, #tpu.memory_space<vmem>> -> memref<1x128xf32, #tpu.memory_space<vmem>>
      %22 = tpu.memref_squeeze %21 : memref<1x128xf32, #tpu.memory_space<vmem>> -> memref<128xf32, #tpu.memory_space<vmem>>
      %23 = tpu.memref_slice %arg11[%c0_i32_18] : memref<2x!tpu.dma_semaphore, #tpu.memory_space<semaphore_mem>> -> memref<1x!tpu.dma_semaphore, #tpu.memory_space<semaphore_mem>>
      %24 = tpu.memref_squeeze %23 : memref<1x!tpu.dma_semaphore, #tpu.memory_space<semaphore_mem>> -> memref<!tpu.dma_semaphore, #tpu.memory_space<semaphore_mem>>
      tpu.enqueue_dma source(%20 : memref<128xf32, #tpu.memory_space<any>>) target(%22 : memref<128xf32, #tpu.memory_space<vmem>>) target_semaphore(%24 : memref<!tpu.dma_semaphore, #tpu.memory_space<semaphore_mem>>)
      %25 = arith.addi %0, %15 : i32
      %26 = arith.index_cast %25 : i32 to index
      %27 = memref.load %arg2[%26] : memref<64xi32, #tpu.memory_space<smem>>
      %c1_i32_21 = arith.constant 1 : i32
      %c0_i32_22 = arith.constant 0 : i32
      %28 = tpu.memref_slice %arg4[%27, %c0_i32_22] : memref<5x128xf32, #tpu.memory_space<any>> -> memref<1x128xf32, #tpu.memory_space<any>>
      %29 = tpu.memref_squeeze %28 : memref<1x128xf32, #tpu.memory_space<any>> -> memref<128xf32, #tpu.memory_space<any>>
      %c0_i32_23 = arith.constant 0 : i32
      %30 = tpu.memref_slice %arg10[%15, %c0_i32_23] : memref<64x128xf32, #tpu.memory_space<vmem>> -> memref<1x128xf32, #tpu.memory_space<vmem>>
      %31 = tpu.memref_squeeze %30 : memref<1x128xf32, #tpu.memory_space<vmem>> -> memref<128xf32, #tpu.memory_space<vmem>>
      %32 = tpu.memref_slice %arg11[%c1_i32_21] : memref<2x!tpu.dma_semaphore, #tpu.memory_space<semaphore_mem>> -> memref<1x!tpu.dma_semaphore, #tpu.memory_space<semaphore_mem>>
      %33 = tpu.memref_squeeze %32 : memref<1x!tpu.dma_semaphore, #tpu.memory_space<semaphore_mem>> -> memref<!tpu.dma_semaphore, #tpu.memory_space<semaphore_mem>>
      tpu.enqueue_dma source(%29 : memref<128xf32, #tpu.memory_space<any>>) target(%31 : memref<128xf32, #tpu.memory_space<vmem>>) target_semaphore(%33 : memref<!tpu.dma_semaphore, #tpu.memory_space<semaphore_mem>>)
    }
    %c64_i32_1 = arith.constant 64 : i32
    %c0_i32_2 = arith.constant 0 : i32
    %c64_i32_3 = arith.constant 64 : i32
    %2 = arith.addi %c0_i32_2, %c64_i32_3 : i32
    %c1_i32_4 = arith.constant 1 : i32
    scf.for %arg12 = %c0_i32_2 to %2 step %c1_i32_4  : i32 {
      %c0_i32_16 = arith.constant 0 : i32
      %c0_i32_17 = arith.constant 0 : i32
      %c0_i32_18 = arith.constant 0 : i32
      %c0_i32_19 = arith.constant 0 : i32
      %14 = tpu.memref_slice %arg3[%c0_i32_16, %c0_i32_19] : memref<50x128xf32, #tpu.memory_space<any>> -> memref<1x128xf32, #tpu.memory_space<any>>
      %15 = tpu.memref_squeeze %14 : memref<1x128xf32, #tpu.memory_space<any>> -> memref<128xf32, #tpu.memory_space<any>>
      %c0_i32_20 = arith.constant 0 : i32
      %16 = tpu.memref_slice %arg9[%c0_i32_17, %c0_i32_20] : memref<64x128xf32, #tpu.memory_space<vmem>> -> memref<1x128xf32, #tpu.memory_space<vmem>>
      %17 = tpu.memref_squeeze %16 : memref<1x128xf32, #tpu.memory_space<vmem>> -> memref<128xf32, #tpu.memory_space<vmem>>
      %18 = tpu.memref_slice %arg11[%c0_i32_18] : memref<2x!tpu.dma_semaphore, #tpu.memory_space<semaphore_mem>> -> memref<1x!tpu.dma_semaphore, #tpu.memory_space<semaphore_mem>>
      %19 = tpu.memref_squeeze %18 : memref<1x!tpu.dma_semaphore, #tpu.memory_space<semaphore_mem>> -> memref<!tpu.dma_semaphore, #tpu.memory_space<semaphore_mem>>
      tpu.wait_dma2 semaphore(%19 : memref<!tpu.dma_semaphore, #tpu.memory_space<semaphore_mem>>) src(%15 : memref<128xf32, #tpu.memory_space<any>>) dst(%17 : memref<128xf32, #tpu.memory_space<vmem>>)
      %c0_i32_21 = arith.constant 0 : i32
      %c0_i32_22 = arith.constant 0 : i32
      %c1_i32_23 = arith.constant 1 : i32
      %c0_i32_24 = arith.constant 0 : i32
      %20 = tpu.memref_slice %arg4[%c0_i32_21, %c0_i32_24] : memref<5x128xf32, #tpu.memory_space<any>> -> memref<1x128xf32, #tpu.memory_space<any>>
      %21 = tpu.memref_squeeze %20 : memref<1x128xf32, #tpu.memory_space<any>> -> memref<128xf32, #tpu.memory_space<any>>
      %c0_i32_25 = arith.constant 0 : i32
      %22 = tpu.memref_slice %arg10[%c0_i32_22, %c0_i32_25] : memref<64x128xf32, #tpu.memory_space<vmem>> -> memref<1x128xf32, #tpu.memory_space<vmem>>
      %23 = tpu.memref_squeeze %22 : memref<1x128xf32, #tpu.memory_space<vmem>> -> memref<128xf32, #tpu.memory_space<vmem>>
      %24 = tpu.memref_slice %arg11[%c1_i32_23] : memref<2x!tpu.dma_semaphore, #tpu.memory_space<semaphore_mem>> -> memref<1x!tpu.dma_semaphore, #tpu.memory_space<semaphore_mem>>
      %25 = tpu.memref_squeeze %24 : memref<1x!tpu.dma_semaphore, #tpu.memory_space<semaphore_mem>> -> memref<!tpu.dma_semaphore, #tpu.memory_space<semaphore_mem>>
      tpu.wait_dma2 semaphore(%25 : memref<!tpu.dma_semaphore, #tpu.memory_space<semaphore_mem>>) src(%21 : memref<128xf32, #tpu.memory_space<any>>) dst(%23 : memref<128xf32, #tpu.memory_space<vmem>>)
    }
    %c0 = arith.constant 0 : index
    %c0_5 = arith.constant 0 : index
    %3 = vector.load %arg9[%c0, %c0_5] : memref<64x128xf32, #tpu.memory_space<vmem>>, vector<64x128xf32>
    %c0_6 = arith.constant 0 : index
    %c0_7 = arith.constant 0 : index
    %4 = vector.load %arg10[%c0_6, %c0_7] : memref<64x128xf32, #tpu.memory_space<vmem>>, vector<64x128xf32>
    %5 = arith.addf %3, %4 : vector<64x128xf32>
    %c0_8 = arith.constant 0 : index
    %c0_9 = arith.constant 0 : index
    %6 = vector.load %arg7[%c0_8, %c0_9] : memref<64x128xf32, #tpu.memory_space<vmem>>, vector<64x128xf32>
    tpu.vector_store %arg7[%c0_8, %c0_9], %5 {strides = array<i32>} : memref<64x128xf32, #tpu.memory_space<vmem>>, vector<64x128xf32>,
    %c0_10 = arith.constant 0 : index
    %c0_11 = arith.constant 0 : index
    %7 = vector.load %arg5[%c0_10, %c0_11] : memref<128x384xf32, #tpu.memory_space<vmem>>, vector<128x384xf32>
    %cst = arith.constant dense<0.000000e+00> : vector<64x384xf32>
    %8 = tpu.matmul %5, %7, %cst {dimension_numbers = #tpu.dot_dimension_numbers<[1], [0], [0], [1], [0, 0, 1, 1], [], []>} : vector<64x128xf32>, vector<128x384xf32>, vector<64x384xf32> -> vector<64x384xf32>
    %c0_12 = arith.constant 0 : index
    %c0_13 = arith.constant 0 : index
    %9 = vector.load %arg6[%c0_12, %c0_13] : memref<1x384xf32, #tpu.memory_space<vmem>>, vector<1x384xf32>
    %10 = vector.broadcast %9 : vector<1x384xf32> to vector<64x384xf32>
    %11 = arith.addf %8, %10 : vector<64x384xf32>
    %12 = arith.truncf %11 : vector<64x384xf32> to vector<64x384xbf16>
    %c0_14 = arith.constant 0 : index
    %c0_15 = arith.constant 0 : index
    %13 = vector.load %arg8[%c0_14, %c0_15] : memref<64x384xbf16, #tpu.memory_space<vmem>>, vector<64x384xbf16>
    tpu.vector_store %arg8[%c0_14, %c0_15], %12 {strides = array<i32>} : memref<64x384xbf16, #tpu.memory_space<vmem>>, vector<64x384xbf16>,
    return
  }
  func.func @transform_2(%arg0: i32, %arg1: memref<64xi32, #tpu.memory_space<smem>>, %arg2: memref<64xi32, #tpu.memory_space<smem>>) -> (i32, i32) {
    %c0_i32 = arith.constant 0 : i32
    %c0_i32_0 = arith.constant 0 : i32
    %c0_i32_1 = arith.constant 0 : i32
    return %c0_i32, %c0_i32_0 : i32, i32
  }
  func.func @transform_3(%arg0: i32, %arg1: memref<64xi32, #tpu.memory_space<smem>>, %arg2: memref<64xi32, #tpu.memory_space<smem>>) -> (i32, i32) {
    %c0_i32 = arith.constant 0 : i32
    %c0_i32_0 = arith.constant 0 : i32
    %c0_i32_1 = arith.constant 0 : i32
    return %c0_i32, %c0_i32_0 : i32, i32
  }
  func.func @transform_4(%arg0: i32, %arg1: memref<64xi32, #tpu.memory_space<smem>>, %arg2: memref<64xi32, #tpu.memory_space<smem>>) -> (i32, i32) {
    %c0_i32 = arith.constant 0 : i32
    %c0_i32_0 = arith.constant 0 : i32
    return %arg0, %c0_i32 : i32, i32
  }
  func.func @transform_5(%arg0: i32, %arg1: memref<64xi32, #tpu.memory_space<smem>>, %arg2: memref<64xi32, #tpu.memory_space<smem>>) -> (i32, i32) {
    %c0_i32 = arith.constant 0 : i32
    %c0_i32_0 = arith.constant 0 : i32
    return %arg0, %c0_i32 : i32, i32
  }
}

</mosaic_0001>

<bundles_post_ra>
// kernel: tpu_custom_call.1
= control target key start
LH: loop header
LB: loop body
LE: loop exit
PB: predicated region body
PF: predicated region fallthrough
CT: control target
= control target key end

     0   :  { %s1117_s0 = inlined_call_operand.hbm [shape: s32[64], index: 0, kind: input, shape index: {}]   ;;  %s1118_s2 = inlined_call_operand.hbm [shape: f32[50,128], index: 2, kind: input, shape index: {}]   ;;  %s1119_s3 = inlined_call_operand.vmem [shape: f32[5,128], index: 3, kind: input, shape index: {}]   ;;  %s1120_s4 = inlined_call_operand.hbm [shape: f32[128,384], index: 4, kind: input, shape index: {}]   ;;  %s1121_s5 = inlined_call_operand.vmem [shape: f32[1,384], index: 5, kind: input, shape index: {}]   ;;  %s1122_s6 = inlined_call_operand.hbm [shape: f32[64,128], index: 6, kind: output, shape index: {0}]   ;;  %s1123_s7 = inlined_call_operand.hbm [shape: bf16[64,384], index: 7, kind: output, shape index: {1}]   ;;  %s1124_s1 = inlined_call_operand.hbm [shape: s32[64], index: 1, kind: input, shape index: {}]  }
   0x1   :  { %s798_s26 = scalar_lea.hbm %s1117_s0, 16 }
   0x2   :  { %p799_p0 = scmp.ne.s32.totalorder %s1117_s0, %s798_s26  ;;  %p802_p1 = scmp.lt.u32.totalorder %s798_s26, %s1117_s0 }
   0x4   :  { %p804_p2 = pnand %p802_p1, %p799_p0 }
   0x6   :  { %807 = shalt.err (!%p804_p2)  }
   0x7   :  { %s936_s8 = smov [#allocation6]   ;;  %s808_s13 = scalar_lea.hbm %s1124_s1, 16 }
   0x8   :  { %14 = dma.hbm_to_smem %s1117_s0, 16, %s936_s8, [#allocation5] }
   0x9   :  { %p809_p3 = scmp.ne.s32.totalorder %s1124_s1, %s808_s13  ;;  %p812_p4 = scmp.lt.u32.totalorder %s808_s13, %s1124_s1 }
   0xb   :  { %p814_p5 = pnand %p812_p4, %p809_p3 }
   0xd   :  { %817 = shalt.err (!%p814_p5)  }
   0xe   :  { %s937_s18 = smov [#allocation7]  }
   0xf   :  { %16 = dma.hbm_to_smem %s1124_s1, 16, %s937_s18, [#allocation5] }
  0x10   :  { %916 = dma.done.wait [#allocation5], 32 }
  0x11   :  { %917 = vsyncadd [#allocation5], 4294967264 }
  0x12   :  { %18 = sfence }
  0x13   :  { %19 = vsyncpa [#allocation9], 0 }
  0x14   :  { %20 = vsyncpa [#allocation10], 0 }
  0x15   :  { %21 = vsyncpa [#allocation13], 0  ;;  %s938_s0 = smov [#allocation8]   ;;  %s818_s24 = scalar_lea.hbm %s1120_s4, 6144 }
  0x16   :  { %s27_s21 = sshll.u32 %s938_s0, 4  ;;  %p819_p6 = scmp.ne.s32.totalorder %s1120_s4, %s818_s24  ;;  %s28_s21 = int_to_ptr.vmem [resolvable:$true] %s27_s21 }
  0x17   :  { %p822_p7 = scmp.lt.u32.totalorder %s818_s24, %s1120_s4 }
  0x19   :  { %p824_p8 = pnand %p822_p7, %p819_p6 }
  0x1b   :  { %827 = shalt.err (!%p824_p8)
}
  0x1c   :  { %s828_s1 = scalar_lea.vmem %s28_s21, 6144  ;;  %p833_p10 = scmp.lt.s32.totalorder %s28_s21, %s28_s21 }
  0x1d   :  { %p829_p9 = scmp.ne.s32.totalorder %s28_s21, %s828_s1  ;;  %p834_p11 = scmp.lt.s32.totalorder %s828_s1, %s828_s1 }
  0x1f   :  { %p835_p12 = por %p834_p11, %p833_p10 }
  0x21   :  { %p836_p13 = pnand %p835_p12, %p829_p9 }
  0x23   :  { %839 = shalt.err (!%p836_p13)
}
  0x24   :  { %s939_s29 = smov 384   ;;  %s940_s30 = smov 24  }
  0x25   :  { %33 = dma.hbm_to_vmem [thread:$0]  %s1120_s4, 6144, %s28_s21, [#allocation9], %s939_s29, %s939_s29, %s940_s30  }
  0x26   :  { %918 = dma.done.wait [#allocation9], 6144  }
  0x27   :  { %919 = vsyncadd [#allocation9], 4294961152  ;;  %s1025_s10 = smov 0  }
  0x28 LB: > { %s47_s11 = sld [smem:[#allocation6 + %s930_s10]]  ;;  %s50_s13 = scalar_lea.vmem [#allocation2], %s930_s10  ;;  %s930_s10 = sphi %s1025_s10, %s45_s10  }
  0x29   : > { %s1032_s12 = sld [smem:[#allocation7 + %s930_s10]]  ;;  %s58_s14 = sshll.u32 %s50_s13, 4  ;;  %s59_s14 = int_to_ptr.vmem [resolvable:$true] %s58_s14 }
  0x2a   : > { %s842_s23 = scalar_lea.hbm %s1118_s2, 896 }
  0x2e   : > { %s603_s4 = sshll.u32 %s47_s11, 4 }
  0x2f   : > { %s49_s17 = scalar_lea.hbm %s1118_s2, %s603_s4  ;;  %s63_s20 = scalar_lea.vmem %s1119_s3, %s1032_s12 }
  0x30   : > { %s840_s0 = scalar_lea.hbm %s49_s17, 16  ;;  %p843_p1 = scmp.lt.u32.totalorder %s49_s17, %s1118_s2 }
  0x31   : > { %p841_p0 = scmp.ne.s32.totalorder %s49_s17, %s840_s0  ;;  %p844_p2 = scmp.lt.u32.totalorder %s842_s23, %s840_s0 }
  0x32   : > { %p846_p4 = scmp.lt.u32.totalorder %s840_s0, %s49_s17 }
  0x33   : > { %p845_p3 = por %p844_p2, %p843_p1 }
  0x35   : > { %p847_p5 = por %p846_p4, %p845_p3 }
  0x37   : > { %p848_p6 = pnand %p847_p5, %p841_p0 }
  0x39   : > { %851 = shalt.err (!%p848_p6)  }
  0x3a   : > { %s852_s26 = scalar_lea.vmem %s59_s14, 16  ;;  %s941_s27 = smov [#allocation2]  }
  0x3b   : > { %p853_p7 = scmp.ne.s32.totalorder %s59_s14, %s852_s26  ;;  %s854_s28 = sshll.u32 %s941_s27, 4  ;;  %s855_s28 = int_to_ptr.vmem [resolvable:$false] %s854_s28 }
  0x3c   : > { %s856_s1 = scalar_lea.vmem %s855_s28, 1024  ;;  %p857_p8 = scmp.lt.s32.totalorder %s59_s14, %s855_s28 }
  0x3d   : > { %p858_p9 = scmp.lt.s32.totalorder %s856_s1, %s852_s26 }
  0x3f   : > { %p859_p10 = por %p858_p9, %p857_p8 }
  0x41   : > { %p860_p11 = pnand %p859_p10, %p853_p7 }
  0x43   : > { %863 = shalt.err (!%p860_p11)  }
  0x44   : > { %61 = dma.hbm_to_vmem [thread:$0]  %s49_s17, 16, %s59_s14, [#allocation4]  ;;  %v83_v0 = vld [vmem:[%s63_s20] sm:$0x1] }
  0x45   : > { %s64_s29 = scalar_lea.vmem [#allocation3], %s930_s10 }
  0x46   : > { %84 = vst [vmem:[%s64_s29] sm:$0x1] %v83_v0 }
  0x47   : > { %109 = vsyncadd [#allocation4 + $0x1], 16  ;;  %s45_s10 = sadd.s32 1, %s930_s10  }
  0x48   : > { %p42_p12 = scmp.ge.s32.totalorder %s45_s10, 64  }
  0x49   :  { %s932_s30 = smov (%p42_p12), 0  }
  0x4a   :  { %44 = sbr.rel (!%p42_p12) target bundleno = 40 (0x28), region = 105 }
  0x51 LB: > { %920 = dma.done.wait [#allocation4], 16  ;;  %s934_s30 = sphi %s932_s30, %s115_s30  }
  0x52   : > { %921 = vsyncadd [#allocation4], 4294967280 }
  0x53   : > { %922 = dma.done.wait [#allocation4 + $0x1], 16 }
  0x54   : > { %923 = vsyncadd [#allocation4 + $0x1], 4294967280  ;;  %s115_s30 = sadd.s32 1, %s934_s30  }
  0x55   : > { %p112_p13 = scmp.ge.s32.totalorder %s115_s30, 64  }
  0x56   :  { %v154_v1 = vld [vmem:[#allocation8 + $0x8] sm:$0xff] (%p112_p13)  ;;  %v157_v2 = vld [vmem:[#allocation8 + $0x20] sm:$0xff] (%p112_p13)  ;;  %v156_v5 = vld [vmem:[#allocation8 + $0x18] sm:$0xff] (%p112_p13)  ;;  %v942_v8 = vmov (%p112_p13), 0.0   ;;  %s943_s2 = smov (%p112_p13), [#allocation11]  }
  0x57   :  { %114 = sbr.rel (!%p112_p13) target bundleno = 81 (0x51), region = 116  ;;  %v153_v3 = vld [vmem:[#allocation8] sm:$0xff] (%p112_p13)  ;;  %v706_v4 = vpack.c.bf16 (%p112_p13), %v157_v2, %v154_v1  ;;  %v160_v6 = vld [vmem:[#allocation8 + $0x38] sm:$0xff] (%p112_p13)  ;;  %v163_v7 = vld [vmem:[#allocation8 + $0x50] sm:$0xff] (%p112_p13)  ;;  %282 = vmatprep.mubr.f32.mxu0 (%p112_p13), %v942_v8  ;;  %s537_s3 = sshll.u32 (%p112_p13), %s943_s2, 4  ;;  %s538_s3 = int_to_ptr.vmem [resolvable:$true] %s537_s3 }
  0x58   :  { %v708_v9 = vpack.c.bf16 (%p112_p13), %v156_v5, %v153_v3  ;;  %v710_v10 = vpack.c.bf16 (%p112_p13), %v163_v7, %v160_v6  ;;  %v159_v11 = vld [vmem:[#allocation8 + $0x30] sm:$0xff] (%p112_p13)  ;;  %v162_v12 = vld [vmem:[#allocation8 + $0x48] sm:$0xff] (%p112_p13)  ;;  %v169_v14 = vld [vmem:[#allocation8 + $0x80] sm:$0xff] (%p112_p13)  ;;  %s864_s8 = scalar_lea.vmem (%p112_p13), %s538_s3, 1024  ;;  %p869_p1 = scmp.lt.s32.totalorder (%p112_p13), %s538_s3, %s538_s3 }
  0x59   :  { %v166_v13 = vld [vmem:[#allocation8 + $0x68] sm:$0xff] (%p112_p13)  ;;  %707 = vmatprep.subr.bf16.mxu0 (%p112_p13), %v706_v4  ;;  %v712_v15 = vpack.c.bf16 (%p112_p13), %v162_v12, %v159_v11  ;;  %v165_v16 = vld [vmem:[#allocation8 + $0x60] sm:$0xff] (%p112_p13)  ;;  %v168_v18 = vld [vmem:[#allocation8 + $0x78] sm:$0xff] (%p112_p13)  ;;  %p865_p0 = scmp.ne.s32.totalorder (%p112_p13), %s538_s3, %s864_s8  ;;  %p870_p2 = scmp.lt.s32.totalorder (%p112_p13), %s864_s8, %s864_s8 }
  0x5a   :  { %709 = vmatpush1.bf16.msra.mxu0 (%p112_p13), %v708_v9  ;;  %v714_v17 = vpack.c.bf16 (%p112_p13), %v169_v14, %v166_v13  ;;  %v155_v19 = vld [vmem:[#allocation8 + $0x10] sm:$0xff] (%p112_p13)  ;;  %v158_v20 = vld [vmem:[#allocation8 + $0x28] sm:$0xff] (%p112_p13)  ;;  %v172_v21 = vld [vmem:[#allocation8 + $0x98] sm:$0xff] (%p112_p13)  ;;  %v716_v26 = vpack.c.bf16 (%p112_p13), %v168_v18, %v165_v16 }
  0x5b   :  { %711 = vmatprep.subr.bf16.mxu0 (%p112_p13), %v710_v10  ;;  %v175_v22 = vld [vmem:[#allocation8 + $0xb0] sm:$0xff] (%p112_p13)  ;;  %v738_v23 = vpack.c.bf16 (%p112_p13), %v158_v20, %v155_v19  ;;  %v161_v24 = vld [vmem:[#allocation8 + $0x40] sm:$0xff] (%p112_p13)  ;;  %v164_v25 = vld [vmem:[#allocation8 + $0x58] sm:$0xff] (%p112_p13)  ;;  %p871_p3 = por (%p112_p13), %p870_p2, %p869_p1 }
  0x5c   :  { %v171_v27 = vld [vmem:[#allocation8 + $0x90] sm:$0xff] (%p112_p13)  ;;  %v742_v28 = vpack.c.bf16 (%p112_p13), %v164_v25, %v161_v24  ;;  %v718_v29 = vpack.c.bf16 (%p112_p13), %v175_v22, %v172_v21  ;;  %v174_v30 = vld [vmem:[#allocation8 + $0xa8] sm:$0xff] (%p112_p13)  ;;  %v181_v34 = vld [vmem:[#allocation8 + $0xe0] sm:$0xff] (%p112_p13) }
  0x5d   :  { %739 = vmatprep.subr.bf16.mxu1 (%p112_p13), %v738_v23  ;;  %v167_v31 = vld [vmem:[#allocation8 + $0x70] sm:$0xff] (%p112_p13)  ;;  %v170_v32 = vld [vmem:[#allocation8 + $0x88] sm:$0xff] (%p112_p13)  ;;  %v173_v36 = vld [vmem:[#allocation8 + $0xa0] sm:$0xff] (%p112_p13)  ;;  %v720_v38 = vpack.c.bf16 (%p112_p13), %v174_v30, %v171_v27  ;;  %p872_p4 = pnand (%p112_p13), %p871_p3, %p865_p0 }
  0x5e   :  { %713 = vmatpush1.bf16.msra.mxu0 %v712_v15  ;;  %741 = vmatpush3.bf16.msra.mxu1 %v738_v23  ;;  %v178_v33 = vld [vmem:[#allocation8 + $0xc8] sm:$0xff]  ;;  %v746_v35 = vpack.c.bf16 %v170_v32, %v167_v31  ;;  %v176_v37 = vld [vmem:[#allocation8 + $0xb8] sm:$0xff]  ;;  %v177_v39 = vld [vmem:[#allocation8 + $0xc0] sm:$0xff] }
  0x5f   :  { %715 = vmatprep.subr.bf16.mxu0 %v714_v17  ;;  %743 = vmatprep.subr.bf16.mxu1 %v742_v28  ;;  %v722_v40 = vpack.c.bf16 %v181_v34, %v178_v33  ;;  %v180_v41 = vld [vmem:[#allocation8 + $0xd8] sm:$0xff]  ;;  %v187_v43 = vld [vmem:[#allocation8 + $0x110] sm:$0xff]  ;;  %v750_v44 = vpack.c.bf16 %v176_v37, %v173_v36  ;;  %v121_v46 = vld [vmem:[#allocation2] sm:$0xff] }
  0x60   :  { %v184_v42 = vld [vmem:[#allocation8 + $0xf8] sm:$0xff]  ;;  %v179_v45 = vld [vmem:[#allocation8 + $0xd0] sm:$0xff]  ;;  %v129_v47 = vld [vmem:[#allocation3] sm:$0xff]  ;;  %v724_v54 = vpack.c.bf16 %v180_v41, %v177_v39 }
  0x61   :  { %v183_v48 = vld [vmem:[#allocation8 + $0xf0] sm:$0xff]  ;;  %v186_v49 = vld [vmem:[#allocation8 + $0x108] sm:$0xff]  ;;  %v1053_v51 = vadd.f32 %v129_v47, %v121_v46  ;;  %v193_v56 = vld [vmem:[#allocation8 + $0x140] sm:$0xff]  ;;  %v726_v59 = vpack.c.bf16 %v187_v43, %v184_v42 }
  0x62   :  { %717 = vmatpush1.bf16.msra.mxu0 %v716_v26  ;;  %745 = vmatpush3.bf16.msra.mxu1 %v742_v28  ;;  %v182_v50 = vld [vmem:[#allocation8 + $0xe8] sm:$0xff]  ;;  %v123_v58 = vld [vmem:[#allocation2 + $0x10] sm:$0xff]  ;;  %v185_v60 = vld [vmem:[#allocation8 + $0x100] sm:$0xff]  ;;  %v728_v9 = vpack.c.bf16 %v186_v49, %v183_v48 }
  0x63   :  { %719 = vmatprep.subr.bf16.mxu0 %v718_v29  ;;  %747 = vmatprep.subr.bf16.mxu1 %v746_v35  ;;  %v122_v52 = vld [vmem:[#allocation2 + $0x8] sm:$0xff]  ;;  %145 = vst [vmem:[#allocation11] sm:$0xff] %v1053_v51  ;;  %v188_v61 = vld [vmem:[#allocation8 + $0x118] sm:$0xff]  ;;  %v131_v62 = vld [vmem:[#allocation3 + $0x10] sm:$0xff]  ;;  %v754_v63 = vpack.c.bf16 %v182_v50, %v179_v45 }
  0x64   :  { %v130_v53 = vld [vmem:[#allocation3 + $0x8] sm:$0xff]  ;;  %v139_v0 = vadd.f32 %v131_v62, %v123_v58  ;;  %v124_v1 = vld [vmem:[#allocation2 + $0x18] sm:$0xff]  ;;  %694 = vmatprep.mubr.f32.mxu1 %v1053_v51  ;;  %v125_v3 = vld [vmem:[#allocation2 + $0x20] sm:$0xff]  ;;  %v758_v22 = vpack.c.bf16 %v188_v61, %v185_v60 }
  0x65   :  { %v190_v55 = vld [vmem:[#allocation8 + $0x128] sm:$0xff]  ;;  %v1055_v57 = vadd.f32 %v130_v53, %v122_v52  ;;  %v132_v2 = vld [vmem:[#allocation3 + $0x18] sm:$0xff]  ;;  %v133_v5 = vld [vmem:[#allocation3 + $0x20] sm:$0xff] }
  0x66   :  { %721 = vmatpush1.bf16.msra.mxu0 %v720_v38  ;;  %749 = vmatpush3.bf16.msra.mxu1 %v746_v35  ;;  %v140_v4 = vadd.f32 %v132_v2, %v124_v1  ;;  %v126_v6 = vld [vmem:[#allocation2 + $0x28] sm:$0xff]  ;;  %147 = vst [vmem:[#allocation11 + $0x10] sm:$0xff] %v139_v0  ;;  %v141_v10 = vadd.f32 %v133_v5, %v125_v3  ;;  %v127_v12 = vld [vmem:[#allocation2 + $0x30] sm:$0xff]  ;;  %v128_v14 = vld [vmem:[#allocation2 + $0x38] sm:$0xff] }
  0x67   :  { %723 = vmatprep.subr.bf16.mxu0 %v722_v40  ;;  %751 = vmatprep.subr.bf16.mxu1 %v750_v44  ;;  %146 = vst [vmem:[#allocation11 + $0x8] sm:$0xff] %v1055_v57  ;;  %v134_v7 = vld [vmem:[#allocation3 + $0x28] sm:$0xff]  ;;  %v135_v13 = vld [vmem:[#allocation3 + $0x30] sm:$0xff]  ;;  %v730_v15 = vpack.c.bf16 %v193_v56, %v190_v55  ;;  %v189_v16 = vld [vmem:[#allocation8 + $0x120] sm:$0xff] }
  0x68   :  { %v142_v11 = vadd.f32 %v134_v7, %v126_v6  ;;  %v192_v17 = vld [vmem:[#allocation8 + $0x138] sm:$0xff]  ;;  %148 = vst [vmem:[#allocation11 + $0x18] sm:$0xff] %v140_v4  ;;  %v143_v18 = vadd.f32 %v135_v13, %v127_v12  ;;  %v199_v21 = vld [vmem:[#allocation8 + $0x170] sm:$0xff]  ;;  %149 = vst [vmem:[#allocation11 + $0x20] sm:$0xff] %v141_v10 }
  0x69   :  { %v136_v19 = vld [vmem:[#allocation3 + $0x38] sm:$0xff]  ;;  %v191_v24 = vld [vmem:[#allocation8 + $0x130] sm:$0xff]  ;;  %v194_v25 = vld [vmem:[#allocation8 + $0x148] sm:$0xff]  ;;  %v732_v26 = vpack.c.bf16 %v192_v17, %v189_v16 }
  0x6a   :  { %725 = vmatpush1.bf16.msra.mxu0 %v724_v54  ;;  %753 = vmatpush3.bf16.msra.mxu1 %v750_v44  ;;  %v196_v20 = vld [vmem:[#allocation8 + $0x158] sm:$0xff]  ;;  %150 = vst [vmem:[#allocation11 + $0x28] sm:$0xff] %v142_v11  ;;  %v144_v23 = vadd.f32 %v136_v19, %v128_v14  ;;  %151 = vst [vmem:[#allocation11 + $0x30] sm:$0xff] %v143_v18  ;;  %v195_v28 = vld [vmem:[#allocation8 + $0x150] sm:$0xff]  ;;  %v762_v30 = vpack.c.bf16 %v194_v25, %v191_v24 }
  0x6b   :  { %727 = vmatprep.subr.bf16.mxu0 %v726_v59  ;;  %755 = vmatprep.subr.bf16.mxu1 %v754_v63  ;;  %v734_v27 = vpack.c.bf16 %v199_v21, %v196_v20  ;;  %v198_v29 = vld [vmem:[#allocation8 + $0x168] sm:$0xff]  ;;  %v197_v31 = vld [vmem:[#allocation8 + $0x160] sm:$0xff]  ;;  %v200_v32 = vld [vmem:[#allocation8 + $0x178] sm:$0xff] }
  0x6c   :  { %152 = vst [vmem:[#allocation11 + $0x38] sm:$0xff] %v144_v23  ;;  %v736_v33 = vpack.c.bf16 %v198_v29, %v195_v28  ;;  %v766_v34 = vpack.c.bf16 %v200_v32, %v197_v31 }
  0x6e   :  { %729 = vmatpush1.bf16.msra.mxu0 %v728_v9  ;;  %757 = vmatpush3.bf16.msra.mxu1 %v754_v63 }
  0x6f   :  { %731 = vmatprep.subr.bf16.mxu0 %v730_v15  ;;  %759 = vmatprep.subr.bf16.mxu1 %v758_v22 }
  0x72   :  { %733 = vmatpush1.bf16.msra.mxu0 %v732_v26  ;;  %761 = vmatpush3.bf16.msra.mxu1 %v758_v22 }
  0x73   :  { %735 = vmatprep.subr.bf16.mxu0 %v734_v27  ;;  %763 = vmatprep.subr.bf16.mxu1 %v762_v30 }
  0x76   :  { %737 = vmatpush1.bf16.msra.mxu0 %v736_v33  ;;  %765 = vmatpush3.bf16.msra.mxu1 %v762_v30 }
  0x77   :  { %767 = vmatprep.subr.bf16.mxu1 %v766_v34 }
  0x79   :  { %283 = vmatmul.mubr.f32.vlgmr.msra.gmra.mrb[0].mxu0 %v1053_v51 }
  0x7a   :  { %288 = vmatprep.mubr.f32.mxu0 %v942_v8  ;;  %769 = vmatpush3.bf16.msra.mxu1 %v766_v34 }
  0x7d   :  { %289 = vmatmul.mubr.f32.gmra.mrb[2].mxu0 %v1055_v57  ;;  %695 = vmatmul.mubr.f32.vlgmr.msra.gmra.mrb[0].mxu1 %v1055_v57 }
  0x7e   :  { %294 = vmatprep.mubr.f32.mxu0 %v942_v8  ;;  %697 = vmatprep.mubr.f32.mxu1 %v139_v0 }
  0x81   :  { %295 = vmatmul.mubr.f32.gmra.mrb[4].mxu0 %v139_v0  ;;  %698 = vmatmul.mubr.f32.gmra.mrb[2].mxu1 %v140_v4 }
  0x82   :  { %300 = vmatprep.mubr.f32.mxu0 %v942_v8  ;;  %700 = vmatprep.mubr.f32.mxu1 %v141_v10 }
  0x85   :  { %301 = vmatmul.mubr.f32.gmra.mrb[6].mxu0 %v140_v4  ;;  %701 = vmatmul.mubr.f32.gmra.mrb[4].mxu1 %v142_v11 }
  0x86   :  { %306 = vmatprep.mubr.f32.mxu0 %v942_v8  ;;  %703 = vmatprep.mubr.f32.mxu1 %v143_v18 }
  0x89   :  { %307 = vmatmul.mubr.f32.gmra.mrb[8].mxu0 %v141_v10  ;;  %704 = vmatmul.mubr.f32.gmra.mrb[6].mxu1 %v144_v23 }
  0x8a   :  { %312 = vmatprep.mubr.f32.mxu0 %v942_v8 }
  0x8d   :  { %313 = vmatmul.mubr.f32.gmra.mrb[10].mxu0 %v142_v11 }
  0x8e   :  { %318 = vmatprep.mubr.f32.mxu0 %v942_v8 }
  0x91   :  { %319 = vmatmul.mubr.f32.gmra.mrb[12].mxu0 %v143_v18 }
  0x92   :  { %324 = vmatprep.mubr.f32.mxu0 %v942_v8 }
  0x95   :  { %325 = vmatmul.mubr.f32.gmra.mrb[14].mxu0 %v144_v23 }
  0x96   :  { %875 = shalt.err (!%p872_p4)
}
  0x97   :  { %s876_s11 = scalar_lea.hbm %s1122_s6, 1024 }
  0x98   :  { %p877_p5 = scmp.ne.s32.totalorder %s1122_s6, %s876_s11  ;;  %p880_p6 = scmp.lt.u32.totalorder %s876_s11, %s1122_s6 }
  0x9a   :  { %p882_p7 = pnand %p880_p6, %p877_p5 }
  0x9c   :  { %885 = shalt.err (!%p882_p7)
}
  0x9d   :  { %s944_s15 = smov 128   ;;  %s945_s16 = smov 8   ;;  %v203_v8 = vlaneseq  ;;  %v201_v37 = vld [vmem:[%s1121_s5] sm:$0x7] }
  0x9e   :  { %543 = dma.vmem_to_hbm [thread:$0]  %s538_s3, 1024, %s1122_s6, [#allocation10], %s944_s15, %s944_s15, %s945_s16  }
  0x9f   :  { %v204_v35 = vshrl.u32 %v203_v8, 7  ;;  %s946_s5 = smov [#allocation12]  }
  0xa0   :  { %s549_s6 = sshll.u32 %s946_s5, 4  ;;  %s550_s6 = int_to_ptr.vmem [resolvable:$true] %s549_s6 }
  0xa1   :  { %v205_v36 = vsub.s32 0, %v204_v35  ;;  %v209_v38 = vsub.s32 1, %v204_v35  ;;  %v213_v41 = vsub.s32 2, %v204_v35  ;;  %s886_s0 = scalar_lea.vmem %s550_s6, 1536  ;;  %p891_p9 = scmp.lt.s32.totalorder %s550_s6, %s550_s6 }
  0xa2   :  { %p887_p8 = scmp.ne.s32.totalorder %s550_s6, %s886_s0  ;;  %p892_p10 = scmp.lt.s32.totalorder %s886_s0, %s886_s0 }
  0xa3   :  { %v1085_v39 = vrot.slane %v201_v37, %v205_v36  ;;  %v1087_v40 = vrot.slane %v201_v37, %v209_v38  ;;  %v214_v46 = vrot.slane %v201_v37, %v213_v41 }
  0xa4   :  { %p893_p11 = por %p892_p10, %p891_p9 }
  0xa6   :  { %p894_p12 = pnand %p893_p11, %p887_p8 }
 0x14c   :  { %v284_v42 = vpop.f32.mrb[0].mxu0 }
 0x14d   :  { %v285_v43 = vadd.f32 %v284_v42, %v1085_v39  ;;  %v286_v44 = vpop.f32.mrb[1].mxu0 }
 0x14e   :  { %v287_v45 = vadd.f32 %v286_v44, %v1087_v40 }
 0x150   :  { %v622_v47 = vpack.c.bf16 %v287_v45, %v285_v43  ;;  %v290_v48 = vpop.f32.mrb[2].mxu0  ;;  %v696_v51 = vpop.f32.mrb[0].mxu1 }
 0x151   :  { %v291_v49 = vadd.f32 %v290_v48, %v1085_v39  ;;  %v292_v50 = vpop.f32.mrb[3].mxu0  ;;  %v403_v53 = vadd.f32 %v696_v51, %v214_v46  ;;  %v397_v54 = vpop.f32.mrb[1].mxu1 }
 0x152   :  { %516 = vst [vmem:[#allocation12] sm:$0xff] %v622_v47  ;;  %v293_v52 = vadd.f32 %v292_v50, %v1087_v40  ;;  %v398_v55 = vadd.f32 %v397_v54, %v214_v46 }
 0x153   :  { %v625_v58 = vpack.c.bf16 %v403_v53, %v403_v53 }
 0x154   :  { %v624_v56 = vpack.c.bf16 %v293_v52, %v291_v49  ;;  %v296_v57 = vpop.f32.mrb[4].mxu0  ;;  %v623_v61 = vpack.c.bf16 %v398_v55, %v398_v55  ;;  %v699_v62 = vpop.f32.mrb[2].mxu1 }
 0x155   :  { %v297_v59 = vadd.f32 %v296_v57, %v1085_v39  ;;  %v298_v60 = vpop.f32.mrb[5].mxu0  ;;  %519 = vst [vmem:[#allocation12 + $0x14] sm:$0xf] %v625_v58  ;;  %v413_v0 = vadd.f32 %v699_v62, %v214_v46  ;;  %v407_v1 = vpop.f32.mrb[3].mxu1 }
 0x156   :  { %518 = vst [vmem:[#allocation12 + $0xc] sm:$0xff] %v624_v56  ;;  %v299_v63 = vadd.f32 %v298_v60, %v1087_v40  ;;  %517 = vst [vmem:[#allocation12 + $0x8] sm:$0xf] %v623_v61  ;;  %v408_v2 = vadd.f32 %v407_v1, %v214_v46 }
 0x157   :  { %v629_v5 = vpack.c.bf16 %v413_v0, %v413_v0 }
 0x158   :  { %v626_v3 = vpack.c.bf16 %v299_v63, %v297_v59  ;;  %v302_v4 = vpop.f32.mrb[6].mxu0  ;;  %v627_v9 = vpack.c.bf16 %v408_v2, %v408_v2  ;;  %v702_v10 = vpop.f32.mrb[4].mxu1 }
 0x159   :  { %v303_v6 = vadd.f32 %v302_v4, %v1085_v39  ;;  %v304_v7 = vpop.f32.mrb[7].mxu0  ;;  %523 = vst [vmem:[#allocation12 + $0x2c] sm:$0xf] %v629_v5  ;;  %v423_v12 = vadd.f32 %v702_v10, %v214_v46  ;;  %v417_v13 = vpop.f32.mrb[5].mxu1 }
 0x15a   :  { %520 = vst [vmem:[#allocation12 + $0x18] sm:$0xff] %v626_v3  ;;  %v305_v11 = vadd.f32 %v304_v7, %v1087_v40  ;;  %521 = vst [vmem:[#allocation12 + $0x20] sm:$0xf] %v627_v9  ;;  %v418_v14 = vadd.f32 %v417_v13, %v214_v46 }
 0x15b   :  { %v633_v17 = vpack.c.bf16 %v423_v12, %v423_v12 }
 0x15c   :  { %v628_v15 = vpack.c.bf16 %v305_v11, %v303_v6  ;;  %v308_v16 = vpop.f32.mrb[8].mxu0  ;;  %v631_v20 = vpack.c.bf16 %v418_v14, %v418_v14  ;;  %v705_v21 = vpop.f32.mrb[6].mxu1 }
 0x15d   :  { %v309_v18 = vadd.f32 %v308_v16, %v1085_v39  ;;  %v310_v19 = vpop.f32.mrb[9].mxu0  ;;  %527 = vst [vmem:[#allocation12 + $0x44] sm:$0xf] %v633_v17  ;;  %v433_v23 = vadd.f32 %v705_v21, %v214_v46  ;;  %v427_v24 = vpop.f32.mrb[7].mxu1 }
 0x15e   :  { %522 = vst [vmem:[#allocation12 + $0x24] sm:$0xff] %v628_v15  ;;  %v311_v22 = vadd.f32 %v310_v19, %v1087_v40  ;;  %525 = vst [vmem:[#allocation12 + $0x38] sm:$0xf] %v631_v20  ;;  %v428_v25 = vadd.f32 %v427_v24, %v214_v46 }
 0x15f   :  { %v637_v28 = vpack.c.bf16 %v433_v23, %v433_v23 }
 0x160   :  { %v630_v26 = vpack.c.bf16 %v311_v22, %v309_v18  ;;  %v314_v27 = vpop.f32.mrb[10].mxu0  ;;  %v635_v31 = vpack.c.bf16 %v428_v25, %v428_v25 }
 0x161   :  { %v315_v29 = vadd.f32 %v314_v27, %v1085_v39  ;;  %v316_v30 = vpop.f32.mrb[11].mxu0  ;;  %531 = vst [vmem:[#allocation12 + $0x5c] sm:$0xf] %v637_v28 }
 0x162   :  { %524 = vst [vmem:[#allocation12 + $0x30] sm:$0xff] %v630_v26  ;;  %v317_v32 = vadd.f32 %v316_v30, %v1087_v40  ;;  %529 = vst [vmem:[#allocation12 + $0x50] sm:$0xf] %v635_v31 }
 0x164   :  { %v632_v33 = vpack.c.bf16 %v317_v32, %v315_v29  ;;  %v320_v34 = vpop.f32.mrb[12].mxu0 }
 0x165   :  { %v321_v8 = vadd.f32 %v320_v34, %v1085_v39  ;;  %v322_v35 = vpop.f32.mrb[13].mxu0 }
 0x166   :  { %526 = vst [vmem:[#allocation12 + $0x3c] sm:$0xff] %v632_v33  ;;  %v323_v36 = vadd.f32 %v322_v35, %v1087_v40 }
 0x168   :  { %v634_v37 = vpack.c.bf16 %v323_v36, %v321_v8  ;;  %v326_v38 = vpop.f32.mrb[14].mxu0 }
 0x169   :  { %v327_v41 = vadd.f32 %v326_v38, %v1085_v39  ;;  %v328_v42 = vpop.f32.mrb[15].mxu0 }
 0x16a   :  { %528 = vst [vmem:[#allocation12 + $0x48] sm:$0xff] %v634_v37  ;;  %v329_v43 = vadd.f32 %v328_v42, %v1087_v40 }
 0x16c   :  { %v636_v44 = vpack.c.bf16 %v329_v43, %v327_v41 }
 0x16e   :  { %530 = vst [vmem:[#allocation12 + $0x54] sm:$0xff] %v636_v44 }
 0x16f   :  { %897 = shalt.err (!%p894_p12)
}
 0x170   :  { %s898_s23 = scalar_lea.hbm %s1123_s7, 1536 }
 0x171   :  { %p899_p13 = scmp.ne.s32.totalorder %s1123_s7, %s898_s23  ;;  %p902_p0 = scmp.lt.u32.totalorder %s898_s23, %s1123_s7 }
 0x173   :  { %p904_p1 = pnand %p902_p0, %p899_p13 }
 0x175   :  { %907 = shalt.err (!%p904_p1)
}
 0x176   :  { %s947_s28 = smov 192   ;;  %s948_s1 = smov 12  }
 0x177   :  { %555 = dma.vmem_to_hbm [thread:$0]  %s550_s6, 1536, %s1123_s7, [#allocation13], %s947_s28, %s947_s28, %s948_s1  }
 0x178   :  { %924 = dma.done.wait [#allocation10], 1024  }
 0x179   :  { %925 = vsyncadd [#allocation10], 4294966272 }
 0x17a   :  { %926 = dma.done.wait [#allocation13], 1536  }
 0x17b   :  { %927 = vsyncadd [#allocation13], 4294965760 }
 0x17c   :  { %562 = vsyncpa [#allocation9], 1 }
 0x17d   :  { %563 = vsyncpa [#allocation10], 1 }
 0x17e   :  { %564 = vsyncpa [#allocation13], 1 }
 0x17f   :  { %565 = vsyncmov [#allocation4] }
 0x182   :  { %s566_s2 = vpop.sfrf %565 }
 0x183   :  { %p620_p2 = scmp.ne.s32.totalorder %s566_s2, 0 }
 0x185   :  { %570 = shalt.err (%p620_p2)  }
 0x186   :  { %572 = vsyncmov [#allocation4 + $0x1] }
 0x189   :  { %s573_s3 = vpop.sfrf %572 }
 0x18a   :  { %p621_p3 = scmp.ne.s32.totalorder %s573_s3, 0 }
 0x18c   :  { %577 = shalt.err (%p621_p3)  }

</bundles_post_ra>
